<compile_context>
chip_gen: v7x
topology: tpu7x:2x2x1
jax: 0.10.0
libtpu: 0.0.40
codegen_flags: <defaults>
</compile_context>

<pallas_src>
import jax
import jax.numpy as jnp
from jax.experimental import pallas as pl
from jax.experimental.pallas import tpu as pltpu


def _round_up(a, b):
    return ((a + b - 1) // b) * b


def _pick_lane_width(n):
    """Lane width L (multiple of 128, <= 2048) keeping padding small."""
    if n <= 2048:
        return _round_up(max(n, 1), 128)
    for L in (2048, 1024, 512, 256, 128):
        if (_round_up(n, L) - n) * 16 <= n:  # accept <= ~6% padding
            return L
    return 128


def _pick_row_tile(R, L):
    """Row tile (multiple of 8) targeting ~2 MiB f32 blocks, <= ~12.5% row pad."""
    max_rows = max(8, min(1024, (1 << 19) // L))  # ~512K elems -> ~2 MiB f32
    for t in (1024, 512, 256, 128, 64, 32, 16, 8):
        if t > max_rows:
            continue
        if _round_up(R, t) - R <= max(8, R // 8):
            return t
    return 8


def _linear_quantize_kernel(x_ref, s_ref, z_ref, o_ref):
    # Elementwise hot path: round(scale * x - zero_point).
    # s_ref / z_ref are either (RT, 1) per-row columns or full (RT, L) slabs;
    # in-block broadcasting handles both. jnp.round == torch.round (half-to-even).
    o_ref[...] = jnp.round(s_ref[...] * x_ref[...] - z_ref[...])


def _pallas_apply(xs, ss, zs, row_tile):
    """xs: (Rp, L); ss/zs: (Rp, 1) or (Rp, L). Rp % row_tile == 0."""
    Rp, L = xs.shape
    s_lanes = ss.shape[1]
    return pl.pallas_call(
        _linear_quantize_kernel,
        out_shape=jax.ShapeDtypeStruct((Rp, L), xs.dtype),
        grid_spec=pltpu.PrefetchScalarGridSpec(
            num_scalar_prefetch=0,
            grid=(Rp // row_tile,),
            in_specs=[
                pl.BlockSpec((row_tile, L), lambda i: (i, 0)),
                pl.BlockSpec((row_tile, s_lanes), lambda i: (i, 0)),
                pl.BlockSpec((row_tile, s_lanes), lambda i: (i, 0)),
            ],
            out_specs=pl.BlockSpec((row_tile, L), lambda i: (i, 0)),
        ),
        compiler_params=pltpu.CompilerParams(
            dimension_semantics=("parallel",)),
    )(xs, ss, zs)


def _quantize_per_first_dim(x, scale, zero_point):
    """2D / 4D PyTorch branches: per-first-dim scale / zero_point."""
    orig_shape = x.shape
    B = x.shape[0]
    x2 = x.reshape(B, -1)
    G = x2.shape[1]

    # scale may be size-1 (scalar tensor) or size-B, like torch .view(-1,1,..).
    s_col = jnp.broadcast_to(scale.reshape(-1), (B,))
    z_col = jnp.broadcast_to(zero_point.reshape(-1), (B,))

    # Re-pack each group of G elements into lane-dense rows of width L.
    L = _pick_lane_width(G)
    Gp = _round_up(G, L)
    if Gp != G:
        x2 = jnp.pad(x2, ((0, 0), (0, Gp - G)))
    rows_per_group = Gp // L
    R = B * rows_per_group
    xs = x2.reshape(R, L)
    s_rows = jnp.repeat(s_col, rows_per_group)
    z_rows = jnp.repeat(z_col, rows_per_group)

    # Row padding so the grid tiles evenly with a sublane-aligned row tile.
    RT = _pick_row_tile(R, L)
    Rp = _round_up(R, RT)
    if Rp != R:
        xs = jnp.pad(xs, ((0, Rp - R), (0, 0)))
        s_rows = jnp.pad(s_rows, (0, Rp - R))
        z_rows = jnp.pad(z_rows, (0, Rp - R))

    out = _pallas_apply(xs, s_rows.reshape(Rp, 1), z_rows.reshape(Rp, 1), RT)
    return out[:R].reshape(B, Gp)[:, :G].reshape(orig_shape)


def _quantize_general(x, scale, zero_point):
    """Other ranks: PyTorch broadcasts scale / zero_point directly."""
    orig_shape = x.shape
    s_full = jnp.broadcast_to(scale, x.shape)
    z_full = jnp.broadcast_to(zero_point, x.shape)

    n = x.size
    L = _pick_lane_width(n)
    n_pad = _round_up(n, L)
    R = n_pad // L
    RT = _pick_row_tile(R, L)
    Rp = _round_up(R, RT)

    def prep(a):
        a = a.reshape(-1)
        if n_pad != n:
            a = jnp.pad(a, (0, n_pad - n))
        a = a.reshape(R, L)
        if Rp != R:
            a = jnp.pad(a, ((0, Rp - R), (0, 0)))
        return a

    out = _pallas_apply(prep(x), prep(s_full), prep(z_full), RT)
    return out[:R].reshape(-1)[:n].reshape(orig_shape)


def linear_quantize(x, scale, zero_point):
    """Pallas implementation of LinearQuantizeModule.forward (inplace=False)."""
    scale = jnp.asarray(scale, x.dtype)
    zero_point = jnp.asarray(zero_point, x.dtype)
    if x.ndim in (2, 4):
        return _quantize_per_first_dim(x, scale, zero_point)
    return _quantize_general(x, scale, zero_point)


if __name__ == "__main__":
    key = jax.random.PRNGKey(0)
    k1, k2, k3 = jax.random.split(key, 3)

    # 4D input (NCHW, like PyTorch): batch=2, channels=4, spatial=16x16.
    x = jax.random.normal(k1, (2, 4, 16, 16), dtype=jnp.float32) * 3.0
    scale = jax.random.uniform(k2, (2,), dtype=jnp.float32, minval=1.0, maxval=16.0)
    zero_point = jax.random.uniform(k3, (2,), dtype=jnp.float32, minval=-4.0, maxval=4.0)

    out = jax.block_until_ready(linear_quantize(x, scale, zero_point))
    ref = jnp.round(scale.reshape(-1, 1, 1, 1) * x - zero_point.reshape(-1, 1, 1, 1))
    assert out.shape == x.shape and out.dtype == x.dtype
    assert jnp.allclose(out, ref), "4D path mismatch vs reference"

    # 2D path (per-output-row quantization of a weight matrix).
    w = jax.random.normal(k1, (8, 128), dtype=jnp.float32)
    sw = jnp.linspace(1.0, 4.0, 8, dtype=jnp.float32)
    zw = jnp.linspace(-1.0, 1.0, 8, dtype=jnp.float32)
    out2 = jax.block_until_ready(linear_quantize(w, sw, zw))
    ref2 = jnp.round(sw.reshape(-1, 1) * w - zw.reshape(-1, 1))
    assert jnp.allclose(out2, ref2), "2D path mismatch vs reference"

    # 4D with non-128-aligned inner size (exercises wrapper-side padding).
    xo = jax.random.normal(k2, (2, 3, 7, 5), dtype=jnp.float32)
    out3 = jax.block_until_ready(linear_quantize(xo, scale, zero_point))
    ref3 = jnp.round(scale.reshape(-1, 1, 1, 1) * xo - zero_point.reshape(-1, 1, 1, 1))
    assert jnp.allclose(out3, ref3), "non-aligned 4D path mismatch vs reference"

    # Other-rank fallback: 3D input, directly broadcast scale / zero_point.
    x3 = jax.random.normal(k3, (2, 8, 32), dtype=jnp.float32)
    s3 = jax.random.uniform(k2, (8, 1), dtype=jnp.float32, minval=0.5, maxval=2.0)
    z3 = jax.random.uniform(k1, (8, 1), dtype=jnp.float32, minval=-1.0, maxval=1.0)
    out4 = jax.block_until_ready(linear_quantize(x3, s3, z3))
    ref4 = jnp.round(s3 * x3 - z3)
    assert jnp.allclose(out4, ref4), "general-rank path mismatch vs reference"

    print("KERNEL_OK")
</pallas_src>

<mosaic_0001>
module attributes {stable_mosaic.version = 11 : i64} {
  func.func @_linear_quantize_kernel(%arg0: i32, %arg1: memref<8x1024xf32, #tpu.memory_space<vmem>>, %arg2: memref<8x1xf32, #tpu.memory_space<vmem>>, %arg3: memref<8x1xf32, #tpu.memory_space<vmem>>, %arg4: memref<8x1024xf32, #tpu.memory_space<vmem>>) attributes {dimension_semantics = [#tpu.dimension_semantics<parallel>], iteration_bounds = array<i64: 1>, scalar_prefetch = 0 : i64, scratch_operands = 0 : i64, tpu.core_type = #tpu.core_type<tc>, window_params = [{transform_indices = @transform_0, window_bounds = array<i64: 8, 1024>}, {transform_indices = @transform_1, window_bounds = array<i64: 8, 1>}, {transform_indices = @transform_2, window_bounds = array<i64: 8, 1>}, {transform_indices = @transform_3, window_bounds = array<i64: 8, 1024>}]} {
    %c0 = arith.constant 0 : index
    %c0_0 = arith.constant 0 : index
    %0 = vector.load %arg2[%c0, %c0_0] : memref<8x1xf32, #tpu.memory_space<vmem>>, vector<8x1xf32>
    %c0_1 = arith.constant 0 : index
    %c0_2 = arith.constant 0 : index
    %1 = vector.load %arg1[%c0_1, %c0_2] : memref<8x1024xf32, #tpu.memory_space<vmem>>, vector<8x1024xf32>
    %2 = vector.broadcast %0 : vector<8x1xf32> to vector<8x1024xf32>
    %3 = arith.mulf %2, %1 : vector<8x1024xf32>
    %c0_3 = arith.constant 0 : index
    %c0_4 = arith.constant 0 : index
    %4 = vector.load %arg3[%c0_3, %c0_4] : memref<8x1xf32, #tpu.memory_space<vmem>>, vector<8x1xf32>
    %5 = vector.broadcast %4 : vector<8x1xf32> to vector<8x1024xf32>
    %6 = arith.subf %3, %5 : vector<8x1024xf32>
    %7 = math.roundeven %6 : vector<8x1024xf32>
    %c0_5 = arith.constant 0 : index
    %c0_6 = arith.constant 0 : index
    %8 = vector.load %arg4[%c0_5, %c0_6] : memref<8x1024xf32, #tpu.memory_space<vmem>>, vector<8x1024xf32>
    tpu.vector_store %arg4[%c0_5, %c0_6], %7 {strides = array<i32>} : memref<8x1024xf32, #tpu.memory_space<vmem>>, vector<8x1024xf32>,
    return
  }
  func.func @transform_0(%arg0: i32) -> (i32, i32) {
    %c0_i32 = arith.constant 0 : i32
    %c0_i32_0 = arith.constant 0 : i32
    return %arg0, %c0_i32 : i32, i32
  }
  func.func @transform_1(%arg0: i32) -> (i32, i32) {
    %c0_i32 = arith.constant 0 : i32
    %c0_i32_0 = arith.constant 0 : i32
    return %arg0, %c0_i32 : i32, i32
  }
  func.func @transform_2(%arg0: i32) -> (i32, i32) {
    %c0_i32 = arith.constant 0 : i32
    %c0_i32_0 = arith.constant 0 : i32
    return %arg0, %c0_i32 : i32, i32
  }
  func.func @transform_3(%arg0: i32) -> (i32, i32) {
    %c0_i32 = arith.constant 0 : i32
    %c0_i32_0 = arith.constant 0 : i32
    return %arg0, %c0_i32 : i32, i32
  }
}

</mosaic_0001>

<bundles_post_ra>
// kernel: tpu_custom_call.1
= control target key start
LH: loop header
LB: loop body
LE: loop exit
PB: predicated region body
PF: predicated region fallthrough
CT: control target
= control target key end

     0   :  { %8 = vsyncpa [#allocation3], 0  ;;  %s207_s0 = inlined_call_operand.hbm [shape: f32[8,1024], index: 0, kind: input, shape index: {}]   ;;  %s208_s1 = inlined_call_operand.vmem [shape: f32[8,1], index: 1, kind: input, shape index: {}]   ;;  %s209_s2 = inlined_call_operand.vmem [shape: f32[8,1], index: 2, kind: input, shape index: {}]   ;;  %s210_s3 = inlined_call_operand.hbm [shape: f32[8,1024], index: 3, kind: output, shape index: {}]  }
   0x1   :  { %9 = vsyncpa [#allocation4], 0  ;;  %s154_s12 = smov [#allocation2]   ;;  %s106_s16 = scalar_lea.hbm %s207_s0, 1024 }
   0x2   :  { %s16_s13 = sshll.u32 %s154_s12, 4  ;;  %p107_p0 = scmp.ne.s32.totalorder %s207_s0, %s106_s16  ;;  %s17_s13 = int_to_ptr.vmem [resolvable:$true] %s16_s13 }
   0x3   :  { %p110_p1 = scmp.lt.u32.totalorder %s106_s16, %s207_s0 }
   0x5   :  { %p112_p2 = pnand %p110_p1, %p107_p0 }
   0x7   :  { %115 = shalt.err (!%p112_p2)
}
   0x8   :  { %s116_s21 = scalar_lea.vmem %s17_s13, 1024  ;;  %p121_p4 = scmp.lt.s32.totalorder %s17_s13, %s17_s13 }
   0x9   :  { %p117_p3 = scmp.ne.s32.totalorder %s17_s13, %s116_s21  ;;  %p122_p5 = scmp.lt.s32.totalorder %s116_s21, %s116_s21 }
   0xb   :  { %p123_p6 = por %p122_p5, %p121_p4 }
   0xd   :  { %p124_p7 = pnand %p123_p6, %p117_p3 }
   0xf   :  { %127 = shalt.err (!%p124_p7)
}
  0x10   :  { %19 = dma.hbm_to_vmem [thread:$0]  %s207_s0, 1024, %s17_s13, [#allocation3]  }
  0x11   :  { %150 = dma.done.wait [#allocation3], 1024  }
  0x12   :  { %151 = vsyncadd [#allocation3], 4294966272  ;;  %v155_v0 = vmov 0   ;;  %v27_v1 = vld [vmem:[%s208_s1] sm:$0xff]  ;;  %v29_v4 = vld [vmem:[#allocation2 + $0x8] sm:$0xff]  ;;  %s156_s0 = smov [#allocation5]  }
  0x13   :  { %105 = vset.pattern.permute.xlu0 %v155_v0  ;;  %v49_v2 = vld [vmem:[%s209_s2] sm:$0xff]  ;;  %v30_v6 = vld [vmem:[#allocation2 + $0x10] sm:$0xff]  ;;  %v31_v7 = vld [vmem:[#allocation2 + $0x18] sm:$0xff]  ;;  %s85_s1 = sshll.u32 %s156_s0, 4  ;;  %s86_s1 = int_to_ptr.vmem [resolvable:$true] %s85_s1 }
  0x14   :  { %38 = vperm.xlu0 %105, %v27_v1   ;;  %v28_v3 = vld [vmem:[#allocation2] sm:$0xff]  ;;  %v33_v9 = vld [vmem:[#allocation2 + $0x28] sm:$0xff]  ;;  %v34_v10 = vld [vmem:[#allocation2 + $0x30] sm:$0xff]  ;;  %s128_s2 = scalar_lea.vmem %s86_s1, 1024  ;;  %p133_p9 = scmp.lt.s32.totalorder %s86_s1, %s86_s1 }
  0x15   :  { %v32_v8 = vld [vmem:[#allocation2 + $0x20] sm:$0xff]  ;;  %v35_v11 = vld [vmem:[#allocation2 + $0x38] sm:$0xff]  ;;  %p129_p8 = scmp.ne.s32.totalorder %s86_s1, %s128_s2  ;;  %p134_p10 = scmp.lt.s32.totalorder %s128_s2, %s128_s2 }
  0x17   :  { %p135_p11 = por %p134_p10, %p133_p9 }
  0x18   :  { %52 = vperm.xlu0 %105, %v49_v2  }
  0x19   :  { %p136_p12 = pnand %p135_p11, %p129_p8 }
  0x93   :  { %v39_v5 = vpop.permute.xlu0 %38 }
  0x94   :  { %v41_v12 = vmul.f32 %v39_v5, %v28_v3  ;;  %v42_v13 = vmul.f32 %v39_v5, %v29_v4  ;;  %v43_v14 = vmul.f32 %v39_v5, %v30_v6  ;;  %v44_v15 = vmul.f32 %v39_v5, %v31_v7 }
  0x95   :  { %v45_v16 = vmul.f32 %v39_v5, %v32_v8  ;;  %v46_v17 = vmul.f32 %v39_v5, %v33_v9  ;;  %v47_v18 = vmul.f32 %v39_v5, %v34_v10  ;;  %v48_v19 = vmul.f32 %v39_v5, %v35_v11 }
  0x97   :  { %v53_v20 = vpop.permute.xlu0 %52 }
  0x98   :  { %v55_v21 = vsub.f32 %v41_v12, %v53_v20  ;;  %v56_v22 = vsub.f32 %v42_v13, %v53_v20  ;;  %v57_v23 = vsub.f32 %v43_v14, %v53_v20  ;;  %v58_v24 = vsub.f32 %v44_v15, %v53_v20 }
  0x99   :  { %v59_v25 = vsub.f32 %v45_v16, %v53_v20  ;;  %v60_v26 = vsub.f32 %v46_v17, %v53_v20  ;;  %v61_v27 = vsub.f32 %v47_v18, %v53_v20  ;;  %v62_v28 = vsub.f32 %v48_v19, %v53_v20 }
  0x9a   :  { %v94_v29 = vround.rtne.f32 %v55_v21  ;;  %v95_v30 = vround.rtne.f32 %v56_v22  ;;  %v96_v31 = vround.rtne.f32 %v57_v23  ;;  %v97_v32 = vround.rtne.f32 %v58_v24 }
  0x9b   :  { %v98_v33 = vround.rtne.f32 %v59_v25  ;;  %v99_v34 = vround.rtne.f32 %v60_v26  ;;  %v100_v35 = vround.rtne.f32 %v61_v27  ;;  %v101_v36 = vround.rtne.f32 %v62_v28 }
  0x9c   :  { %71 = vst [vmem:[#allocation5] sm:$0xff] %v94_v29  ;;  %72 = vst [vmem:[#allocation5 + $0x8] sm:$0xff] %v95_v30 }
  0x9d   :  { %73 = vst [vmem:[#allocation5 + $0x10] sm:$0xff] %v96_v31  ;;  %74 = vst [vmem:[#allocation5 + $0x18] sm:$0xff] %v97_v32 }
  0x9e   :  { %75 = vst [vmem:[#allocation5 + $0x20] sm:$0xff] %v98_v33  ;;  %76 = vst [vmem:[#allocation5 + $0x28] sm:$0xff] %v99_v34 }
  0x9f   :  { %77 = vst [vmem:[#allocation5 + $0x30] sm:$0xff] %v100_v35  ;;  %78 = vst [vmem:[#allocation5 + $0x38] sm:$0xff] %v101_v36 }
  0xa0   :  { %139 = shalt.err (!%p136_p12)
}
  0xa1   :  { %s140_s30 = scalar_lea.hbm %s210_s3, 1024 }
  0xa2   :  { %p141_p13 = scmp.ne.s32.totalorder %s210_s3, %s140_s30  ;;  %p144_p0 = scmp.lt.u32.totalorder %s140_s30, %s210_s3 }
  0xa4   :  { %p146_p1 = pnand %p144_p0, %p141_p13 }
  0xa6   :  { %149 = shalt.err (!%p146_p1)
}
  0xa7   :  { %88 = dma.vmem_to_hbm [thread:$0]  %s86_s1, 1024, %s210_s3, [#allocation4]  }
  0xa8   :  { %152 = dma.done.wait [#allocation4], 1024  }
  0xa9   :  { %153 = vsyncadd [#allocation4], 4294966272 }
  0xaa   :  { %92 = vsyncpa [#allocation3], 1 }
  0xab   :  { %93 = vsyncpa [#allocation4], 1 }

</bundles_post_ra>
